<compile_context>
chip_gen: v7x
topology: tpu7x:2x2x1
jax: 0.10.0
libtpu: 0.0.40
codegen_flags: <defaults>
</compile_context>

<pallas_src>
import functools

import jax
import jax.numpy as jnp
from jax.experimental import pallas as pl
from jax.experimental.pallas import tpu as pltpu


def _round_up(x, m):
    return (x + m - 1) // m * m


def _vmem_capacity_bytes():
    try:
        info = pltpu.get_tpu_info()
        return int(getattr(info, "vmem_capacity_bytes", 128 << 20))
    except Exception:  # interpret mode / query unavailable -> conservative default
        return 128 << 20


def _choose_pack(D, H, O, max_weight_bytes=4 << 20):
    """How many rows to fold into the lane dim.  Prefer PACK*O == 128 (lane-dense
    output store); shrink if the block-diagonal weights would not stay
    comfortably VMEM-resident."""
    if O <= 128 and 128 % O == 0:
        pack = 128 // O
    else:
        pack = 8
    while pack > 1 and 2 * pack * pack * (D * H + H * O) > max_weight_bytes:
        pack //= 2
    return max(pack, 1)


def _choose_tile_packed_rows(m_p, bytes_per_packed_row, target_step_bytes,
                             min_steps=8, align=16):
    """Packed-row tile: big enough that each grid step moves >= target_step_bytes
    of HBM traffic (amortizes ~0.35us/step pipeline overhead), capped so large
    inputs keep >= min_steps grid steps (megacore + double buffering) and so
    small/ragged inputs do not pay for a near-empty padded tile."""
    t = target_step_bytes // max(bytes_per_packed_row, 1)
    t = min(t, max(pl.cdiv(m_p, min_steps), align))   # keep >= min_steps steps
    t = min(t, _round_up(m_p, align))                 # never exceed padded total
    return max(align, _round_up(int(t), align))


def rowwise_mlp_kernel(x_ref, w1_ref, b1_ref, w2_ref, b2_ref, o_ref):
    # x_ref : (tm_p, PACK*D) f32  -- PACK original rows packed per sublane row
    # w1_ref: (PACK*D, PACK*H) bf16 block-diagonal;  b1_ref: (1, PACK*H) f32
    # w2_ref: (PACK*H, PACK*O) bf16 block-diagonal;  b2_ref: (1, PACK*O) f32
    # o_ref : (tm_p, PACK*O) f32  -- lane-dense output slab
    x = x_ref[...].astype(w1_ref.dtype)   # bf16 cast in-kernel: free VPU filler
    h = jnp.dot(x, w1_ref[...], preferred_element_type=jnp.float32) + b1_ref[...]
    h = jnp.maximum(h, 0.0)               # ReLU on fully lane-dense f32 vregs
    y = jnp.dot(h.astype(w2_ref.dtype), w2_ref[...],
                preferred_element_type=jnp.float32) + b2_ref[...]
    o_ref[...] = y


@functools.partial(jax.jit, static_argnames=("compute_dtype",))
def rowwise_encoder(x, w1, b1, w2, b2, *, compute_dtype=jnp.bfloat16):
    """x: (B, N, D) float32 -> (B, N, O) float32.

    Weights are stored (in, out) — transpose of torch's (out, in) — so the
    kernel computes plain `x @ w + b`.
    """
    B, N, D = x.shape
    H = w1.shape[1]
    O = w2.shape[1]
    M = B * N

    pack = _choose_pack(D, H, O)
    m_p = pl.cdiv(M, pack)                     # packed rows of real data
    bytes_per_packed_row = pack * (D + O) * 4  # f32 in + f32 out per packed row

    vmem_cap = _vmem_capacity_bytes()
    # v7x (64 MiB VMEM, ~3.2 TB/s HBM): target bigger steps; v5e/v6e: ~2 MiB.
    target_step_bytes = (4 << 20) if vmem_cap <= (64 << 20) else (2 << 20)
    tm_p = _choose_tile_packed_rows(m_p, bytes_per_packed_row, target_step_bytes)
    grid_m = pl.cdiv(m_p, tm_p)
    m_p_pad = grid_m * tm_p
    m_pad = m_p_pad * pack

    # Input stays f32 end-to-end in HBM (no cast round trip); the only
    # wrapper-side copy is the bounded zero-pad for the ragged tail.
    x2d = x.reshape(M, D)
    if m_pad != M:
        x2d = jnp.pad(x2d, ((0, m_pad - M), (0, 0)))
    x_packed = x2d.reshape(m_p_pad, pack * D)

    # Block-diagonal weights (kron(I_pack, W)) and lane-tiled biases: the packed
    # layout then computes exactly the original per-row MLP.
    eye = jnp.eye(pack, dtype=jnp.float32)
    w1_bd = jnp.kron(eye, w1.astype(jnp.float32)).astype(compute_dtype)
    w2_bd = jnp.kron(eye, w2.astype(jnp.float32)).astype(compute_dtype)
    b1_t = jnp.tile(b1.astype(jnp.float32), pack).reshape(1, pack * H)
    b2_t = jnp.tile(b2.astype(jnp.float32), pack).reshape(1, pack * O)

    w_itemsize = jnp.dtype(compute_dtype).itemsize
    w_bytes = pack * pack * (D * H + H * O) * w_itemsize + pack * (H + O) * 4

    # VMEM: double-buffered x/out tiles + resident (double-buffered) weights +
    # in-kernel temporaries, 2x headroom, clamped below the physical per-TC
    # budget with room for compiler/internal scratch (v7x: ~52 MiB of 64 MiB).
    est = (2 * tm_p * pack * D * 4
           + 2 * tm_p * pack * O * 4
           + 2 * w_bytes
           + tm_p * pack * (D * w_itemsize + H * (4 + w_itemsize) + O * 4))
    vmem_budget = max(32 << 20, min(vmem_cap - (12 << 20), 112 << 20))
    vmem_limit = int(min(max(2 * est, 32 << 20), vmem_budget))

    cost = pl.CostEstimate(
        flops=2 * m_p_pad * pack * pack * (D * H + H * O),
        transcendentals=0,
        bytes_accessed=m_pad * D * 4 + m_pad * O * 4 + w_bytes,
    )

    # TODO(synk): weight/bias BlockSpecs could take pipeline_mode=pl.Buffered(1)
    # (constant index_map) to shave buffer bookkeeping; skipped — low value.
    out_packed = pl.pallas_call(
        rowwise_mlp_kernel,
        out_shape=jax.ShapeDtypeStruct((m_p_pad, pack * O), jnp.float32),
        grid_spec=pltpu.PrefetchScalarGridSpec(
            num_scalar_prefetch=0,
            grid=(grid_m,),
            in_specs=[
                pl.BlockSpec((tm_p, pack * D), lambda i: (i, 0)),      # x (streamed f32)
                pl.BlockSpec((pack * D, pack * H), lambda i: (0, 0)),  # W1_bd (resident)
                pl.BlockSpec((1, pack * H), lambda i: (0, 0)),         # b1
                pl.BlockSpec((pack * H, pack * O), lambda i: (0, 0)),  # W2_bd (resident)
                pl.BlockSpec((1, pack * O), lambda i: (0, 0)),         # b2
            ],
            out_specs=pl.BlockSpec((tm_p, pack * O), lambda i: (i, 0)),
        ),
        compiler_params=pltpu.CompilerParams(
            dimension_semantics=("parallel",),
            vmem_limit_bytes=vmem_limit,
        ),
        cost_estimate=cost,
    )(x_packed, w1_bd, b1_t, w2_bd, b2_t)

    out2d = out_packed.reshape(m_pad, O)
    if m_pad != M:
        out2d = out2d[:M]
    return out2d.reshape(B, N, O)


def make_params(key, input_dim, hidden_dim, output_dim):
    """Deterministic parameter init (uniform, same bounds as torch Linear default)."""
    k1, k2, k3, k4 = jax.random.split(key, 4)
    bound1 = 1.0 / jnp.sqrt(input_dim)
    bound2 = 1.0 / jnp.sqrt(hidden_dim)
    # stored as (in, out) so kernel does x @ w
    w1 = jax.random.uniform(k1, (input_dim, hidden_dim), jnp.float32, -bound1, bound1)
    b1 = jax.random.uniform(k2, (hidden_dim,), jnp.float32, -bound1, bound1)
    w2 = jax.random.uniform(k3, (hidden_dim, output_dim), jnp.float32, -bound2, bound2)
    b2 = jax.random.uniform(k4, (output_dim,), jnp.float32, -bound2, bound2)
    return w1, b1, w2, b2


def _reference(x, w1, b1, w2, b2):
    """Plain-f32 JAX reference matching the PyTorch module's math."""
    B, N, D = x.shape
    h = jnp.maximum(x.reshape(B * N, D) @ w1 + b1, 0.0)
    y = h @ w2 + b2
    return y.reshape(B, N, -1)


if __name__ == "__main__":
    input_dim = 16
    hidden_dim = 32
    output_dim = 8

    key = jax.random.PRNGKey(0)
    kx, kp, kx2, kx3 = jax.random.split(key, 4)
    w1, b1, w2, b2 = make_params(kp, input_dim, hidden_dim, output_dim)

    # Case 1: small shape from the module spec.
    B, N = 2, 8
    x = jax.random.normal(kx, (B, N, input_dim), jnp.float32)
    out = jax.block_until_ready(rowwise_encoder(x, w1, b1, w2, b2))
    ref = _reference(x, w1, b1, w2, b2)
    assert out.shape == (B, N, output_dim)
    assert out.dtype == jnp.float32
    assert jnp.allclose(out, ref, atol=2e-2, rtol=2e-2)

    # Case 2: ragged row count (exercises pack/tile padding path).
    B2, N2 = 3, 5
    x2 = jax.random.normal(kx2, (B2, N2, input_dim), jnp.float32)
    out2 = jax.block_until_ready(rowwise_encoder(x2, w1, b1, w2, b2))
    ref2 = _reference(x2, w1, b1, w2, b2)
    assert out2.shape == (B2, N2, output_dim)
    assert jnp.allclose(out2, ref2, atol=2e-2, rtol=2e-2)

    # Case 3: larger ragged input (exercises multi-step grid + packed layout).
    B3, N3 = 4, 600
    x3 = jax.random.normal(kx3, (B3, N3, input_dim), jnp.float32)
    out3 = jax.block_until_ready(rowwise_encoder(x3, w1, b1, w2, b2))
    ref3 = _reference(x3, w1, b1, w2, b2)
    assert out3.shape == (B3, N3, output_dim)
    assert jnp.allclose(out3, ref3, atol=2e-2, rtol=2e-2)

    print("KERNEL_OK")
</pallas_src>

<mosaic_0001>
module attributes {stable_mosaic.version = 11 : i64} {
  func.func @rowwise_mlp_kernel(%arg0: i32, %arg1: memref<16x256xf32, #tpu.memory_space<vmem>>, %arg2: memref<256x512xbf16, #tpu.memory_space<vmem>>, %arg3: memref<1x512xf32, #tpu.memory_space<vmem>>, %arg4: memref<512x128xbf16, #tpu.memory_space<vmem>>, %arg5: memref<1x128xf32, #tpu.memory_space<vmem>>, %arg6: memref<16x128xf32, #tpu.memory_space<vmem>>) attributes {dimension_semantics = [#tpu.dimension_semantics<parallel>], iteration_bounds = array<i64: 1>, scalar_prefetch = 0 : i64, scratch_operands = 0 : i64, tpu.core_type = #tpu.core_type<tc>, window_params = [{transform_indices = @transform_0, window_bounds = array<i64: 16, 256>}, {pipeline_mode = #tpu.pipeline_mode<synchronous>, transform_indices = @transform_1, window_bounds = array<i64: 256, 512>}, {pipeline_mode = #tpu.pipeline_mode<synchronous>, transform_indices = @transform_2, window_bounds = array<i64: 1, 512>}, {pipeline_mode = #tpu.pipeline_mode<synchronous>, transform_indices = @transform_3, window_bounds = array<i64: 512, 128>}, {pipeline_mode = #tpu.pipeline_mode<synchronous>, transform_indices = @transform_4, window_bounds = array<i64: 1, 128>}, {transform_indices = @transform_5, window_bounds = array<i64: 16, 128>}]} {
    %c0 = arith.constant 0 : index
    %c0_0 = arith.constant 0 : index
    %0 = vector.load %arg1[%c0, %c0_0] : memref<16x256xf32, #tpu.memory_space<vmem>>, vector<16x256xf32>
    %1 = arith.truncf %0 : vector<16x256xf32> to vector<16x256xbf16>
    %c0_1 = arith.constant 0 : index
    %c0_2 = arith.constant 0 : index
    %2 = vector.load %arg2[%c0_1, %c0_2] : memref<256x512xbf16, #tpu.memory_space<vmem>>, vector<256x512xbf16>
    %cst = arith.constant dense<0.000000e+00> : vector<16x512xf32>
    %3 = tpu.matmul %1, %2, %cst {dimension_numbers = #tpu.dot_dimension_numbers<[1], [0], [0], [1], [0, 0, 1, 1], [], []>} : vector<16x256xbf16>, vector<256x512xbf16>, vector<16x512xf32> -> vector<16x512xf32>
    %c0_3 = arith.constant 0 : index
    %c0_4 = arith.constant 0 : index
    %4 = vector.load %arg3[%c0_3, %c0_4] : memref<1x512xf32, #tpu.memory_space<vmem>>, vector<1x512xf32>
    %5 = vector.broadcast %4 : vector<1x512xf32> to vector<16x512xf32>
    %6 = arith.addf %3, %5 : vector<16x512xf32>
    %cst_5 = arith.constant 0.000000e+00 : f32
    %7 = vector.broadcast %cst_5 : f32 to vector<16x512xf32>
    %8 = arith.maximumf %6, %7 : vector<16x512xf32>
    %9 = arith.truncf %8 : vector<16x512xf32> to vector<16x512xbf16>
    %c0_6 = arith.constant 0 : index
    %c0_7 = arith.constant 0 : index
    %10 = vector.load %arg4[%c0_6, %c0_7] : memref<512x128xbf16, #tpu.memory_space<vmem>>, vector<512x128xbf16>
    %cst_8 = arith.constant dense<0.000000e+00> : vector<16x128xf32>
    %11 = tpu.matmul %9, %10, %cst_8 {dimension_numbers = #tpu.dot_dimension_numbers<[1], [0], [0], [1], [0, 0, 1, 1], [], []>} : vector<16x512xbf16>, vector<512x128xbf16>, vector<16x128xf32> -> vector<16x128xf32>
    %c0_9 = arith.constant 0 : index
    %c0_10 = arith.constant 0 : index
    %12 = vector.load %arg5[%c0_9, %c0_10] : memref<1x128xf32, #tpu.memory_space<vmem>>, vector<1x128xf32>
    %13 = vector.broadcast %12 : vector<1x128xf32> to vector<16x128xf32>
    %14 = arith.addf %11, %13 : vector<16x128xf32>
    %c0_11 = arith.constant 0 : index
    %c0_12 = arith.constant 0 : index
    %15 = vector.load %arg6[%c0_11, %c0_12] : memref<16x128xf32, #tpu.memory_space<vmem>>, vector<16x128xf32>
    tpu.vector_store %arg6[%c0_11, %c0_12], %14 {strides = array<i32>} : memref<16x128xf32, #tpu.memory_space<vmem>>, vector<16x128xf32>,
    return
  }
  func.func @transform_0(%arg0: i32) -> (i32, i32) {
    %c0_i32 = arith.constant 0 : i32
    %c0_i32_0 = arith.constant 0 : i32
    return %arg0, %c0_i32 : i32, i32
  }
  func.func @transform_1(%arg0: i32) -> (i32, i32) {
    %c0_i32 = arith.constant 0 : i32
    %c0_i32_0 = arith.constant 0 : i32
    %c0_i32_1 = arith.constant 0 : i32
    return %c0_i32, %c0_i32_0 : i32, i32
  }
  func.func @transform_2(%arg0: i32) -> (i32, i32) {
    %c0_i32 = arith.constant 0 : i32
    %c0_i32_0 = arith.constant 0 : i32
    %c0_i32_1 = arith.constant 0 : i32
    return %c0_i32, %c0_i32_0 : i32, i32
  }
  func.func @transform_3(%arg0: i32) -> (i32, i32) {
    %c0_i32 = arith.constant 0 : i32
    %c0_i32_0 = arith.constant 0 : i32
    %c0_i32_1 = arith.constant 0 : i32
    return %c0_i32, %c0_i32_0 : i32, i32
  }
  func.func @transform_4(%arg0: i32) -> (i32, i32) {
    %c0_i32 = arith.constant 0 : i32
    %c0_i32_0 = arith.constant 0 : i32
    %c0_i32_1 = arith.constant 0 : i32
    return %c0_i32, %c0_i32_0 : i32, i32
  }
  func.func @transform_5(%arg0: i32) -> (i32, i32) {
    %c0_i32 = arith.constant 0 : i32
    %c0_i32_0 = arith.constant 0 : i32
    return %arg0, %c0_i32 : i32, i32
  }
}

</mosaic_0001>

<bundles_post_ra>
// kernel: tile.13
= control target key start
LH: loop header
LB: loop body
LE: loop exit
PB: predicated region body
PF: predicated region fallthrough
CT: control target
= control target key end

     0   :  { %s28_s0 = inlined_call_operand.vmem [shape: f32[32], index: 0, kind: input, shape index: {}]   ;;  %s29_s1 = inlined_call_operand.vmem [shape: f32[16,32], index: 1, kind: output, shape index: {}]  }
   0x1   :  { %v4_v0 = vld [vmem:[%s28_s0] ss:$0 sm:$0xff] }
   0x2   :  { %5 = vst [vmem:[%s29_s1] sm:$0xff] %v4_v0  ;;  %8 = vst [vmem:[%s29_s1 + $0x8] sm:$0xff] %v4_v0 }

// kernel: tile.14
= control target key start
LH: loop header
LB: loop body
LE: loop exit
PB: predicated region body
PF: predicated region fallthrough
CT: control target
= control target key end

     0   :  { %s57_s8 = smov 96   ;;  %vm3_vm0 = vcmask 261120   ;;  %s59_s15 = smov 64   ;;  %vm9_vm1 = vcmask 1048320   ;;  %vm15_vm2 = vcmask 785920   ;;  %vm21_vm3 = vcmask 523520   ;;  %s94_s0 = inlined_call_operand.vmem [shape: f32[16,32], index: 0, kind: input, shape index: {}]   ;;  %s95_s1 = inlined_call_operand.vmem [shape: f32[1,512], index: 1, kind: output, shape index: {}]  }
   0x1   :  { %v48_v0 = vld [vmem:[%s94_s0 + $0x3] ss:$4 sm:$0xf]   ;;  %v49_v1 = vld [vmem:[%s94_s0 + $0x2] ss:$4 sm:$0xf]  }
   0x2   :  { %7 = vrot.lane.b32.xlu0 %v48_v0, %s57_s8  ;;  %v50_v2 = vld [vmem:[%s94_s0 + $0x1] ss:$4 sm:$0xf]   ;;  %v2_v3 = vld [vmem:[%s94_s0] ss:$4 sm:$0xf]  }
   0x3   :  { %s58_s0 = smov 32   ;;  %4 = vst.msk [vmem:[#allocation0] ss:$8 sm:$0xf] %vm3_vm0, %v2_v3  }
   0x4   :  { %19 = vrot.lane.b32.xlu1 %v50_v2, %s58_s0 }
   0x6   :  { %13 = vrot.lane.b32.xlu0 %v49_v1, %s59_s15 }
  0x74   :  { %v8_v4 = vpop.permute.xlu0 %7  }
  0x75   :  { %10 = vst.msk [vmem:[#allocation0] ss:$8 sm:$0xf] %vm9_vm1, %v8_v4  }
  0x76   :  { %v20_v5 = vpop.permute.xlu1 %19  }
  0x78   :  { %v14_v6 = vpop.permute.xlu0 %13  }
  0x79   :  { %16 = vst.msk [vmem:[#allocation0] ss:$8 sm:$0xf] %vm15_vm2, %v14_v6  }
  0x7a   :  { %22 = vst.msk [vmem:[#allocation0] ss:$8 sm:$0xf] %vm21_vm3, %v20_v5  }
  0x81   :  { %v26_v7 = vld [vmem:[#allocation0] sm:$0x1]  ;;  %v30_v8 = vld [vmem:[#allocation0 + $0x8] sm:$0x1]  ;;  %v35_v9 = vld [vmem:[#allocation0 + $0x10] sm:$0x1] }
  0x82   :  { %28 = vst [vmem:[%s95_s1] sm:$0x1] %v26_v7  ;;  %51 = vst [vmem:[%s95_s1 + $0x1] sm:$0x1] %v30_v8  ;;  %v41_v10 = vld [vmem:[#allocation0 + $0x18] sm:$0x1] }
  0x83   :  { %52 = vst [vmem:[%s95_s1 + $0x2] sm:$0x1] %v35_v9  ;;  %53 = vst [vmem:[%s95_s1 + $0x3] sm:$0x1] %v41_v10 }

// kernel: tile.18
= control target key start
LH: loop header
LB: loop body
LE: loop exit
PB: predicated region body
PF: predicated region fallthrough
CT: control target
= control target key end

     0   :  { %s28_s0 = inlined_call_operand.vmem [shape: f32[8], index: 0, kind: input, shape index: {}]   ;;  %s29_s1 = inlined_call_operand.vmem [shape: f32[16,8], index: 1, kind: output, shape index: {}]  }
   0x1   :  { %v4_v0 = vld [vmem:[%s28_s0] ss:$0 sm:$0xff] }
   0x2   :  { %5 = vst [vmem:[%s29_s1] sm:$0xff] %v4_v0  ;;  %8 = vst [vmem:[%s29_s1 + $0x8] sm:$0xff] %v4_v0 }

// kernel: tile.19
= control target key start
LH: loop header
LB: loop body
LE: loop exit
PB: predicated region body
PF: predicated region fallthrough
CT: control target
= control target key end

     0   :  { %s131_s10 = smov 120   ;;  %s132_s11 = smov 104   ;;  %vm3_vm0 = vcmask 64512   ;;  %vm9_vm1 = vcmask 1048512   ;;  %vm15_vm2 = vcmask 982912   ;;  %vm21_vm3 = vcmask 917312   ;;  %s207_s0 = inlined_call_operand.vmem [shape: f32[16,8], index: 0, kind: input, shape index: {}]   ;;  %s208_s1 = inlined_call_operand.vmem [shape: f32[1,128], index: 1, kind: output, shape index: {}]  }
   0x1   :  { %v101_v0 = vld [vmem:[%s207_s0 + $0xf] sm:$0x1]   ;;  %v103_v1 = vld [vmem:[%s207_s0 + $0xd] sm:$0x1]   ;;  %v102_v2 = vld [vmem:[%s207_s0 + $0xe] sm:$0x1]  }
   0x2   :  { %7 = vrot.lane.b32.xlu0 %v101_v0, %s131_s10  ;;  %19 = vrot.lane.b32.xlu1 %v103_v1, %s132_s11  ;;  %v104_v3 = vld [vmem:[%s207_s0 + $0xc] sm:$0x1]   ;;  %s133_s16 = smov 112   ;;  %s134_s17 = smov 96   ;;  %v105_v4 = vld [vmem:[%s207_s0 + $0xb] sm:$0x1]  }
   0x3   :  { %v106_v5 = vld [vmem:[%s207_s0 + $0xa] sm:$0x1]   ;;  %v2_v6 = vld [vmem:[%s207_s0] sm:$0x1]   ;;  %s135_s24 = smov 88   ;;  %s136_s25 = smov 80  }
   0x4   :  { %4 = vst.msk [vmem:[#allocation0] sm:$0x1] %vm3_vm0, %v2_v6   ;;  %v107_v7 = vld [vmem:[%s207_s0 + $0x9] sm:$0x1]   ;;  %v108_v8 = vld [vmem:[%s207_s0 + $0x8] sm:$0x1]  }
   0x5   :  { %s137_s30 = smov 72   ;;  %s138_s2 = smov 64   ;;  %v109_v9 = vld [vmem:[%s207_s0 + $0x7] sm:$0x1]   ;;  %v110_v10 = vld [vmem:[%s207_s0 + $0x6] sm:$0x1]  }
   0x6   :  { %13 = vrot.lane.b32.xlu0 %v102_v2, %s133_s16  ;;  %25 = vrot.lane.b32.xlu1 %v104_v3, %s134_s17  ;;  %s139_s7 = smov 56   ;;  %s140_s8 = smov 48   ;;  %v111_v11 = vld [vmem:[%s207_s0 + $0x5] sm:$0x1]   ;;  %v112_v12 = vld [vmem:[%s207_s0 + $0x4] sm:$0x1]  }
   0x7   :  { %s141_s13 = smov 40   ;;  %s142_s14 = smov 32   ;;  %v113_v13 = vld [vmem:[%s207_s0 + $0x3] sm:$0x1]   ;;  %v114_v14 = vld [vmem:[%s207_s0 + $0x2] sm:$0x1]  }
   0x8   :  { %s143_s19 = smov 24   ;;  %s144_s20 = smov 16   ;;  %v115_v15 = vld [vmem:[%s207_s0 + $0x1] sm:$0x1]   ;;  %vm27_vm4 = vcmask 851712   ;;  %vm33_vm5 = vcmask 786112  }
   0x9   :  { %s145_s0 = smov 8   ;;  %vm39_vm6 = vcmask 720512   ;;  %vm45_vm7 = vcmask 654912   ;;  %vm51_vm8 = vcmask 589312   ;;  %vm57_vm9 = vcmask 523712  }
   0xa   :  { %31 = vrot.lane.b32.xlu0 %v105_v4, %s135_s24  ;;  %37 = vrot.lane.b32.xlu1 %v106_v5, %s136_s25  ;;  %vm63_vm10 = vcmask 458112   ;;  %vm69_vm11 = vcmask 392512   ;;  %vm75_vm12 = vcmask 326912   ;;  %vm81_vm13 = vcmask 261312  }
   0xb   :  { %vm87_vm14 = vcmask 195712   ;;  %vm93_vm15 = vcmask 130112  }
   0xe   :  { %43 = vrot.lane.b32.xlu0 %v107_v7, %s137_s30  ;;  %49 = vrot.lane.b32.xlu1 %v108_v8, %s138_s2 }
  0x12   :  { %55 = vrot.lane.b32.xlu0 %v109_v9, %s139_s7  ;;  %61 = vrot.lane.b32.xlu1 %v110_v10, %s140_s8 }
  0x16   :  { %67 = vrot.lane.b32.xlu0 %v111_v11, %s141_s13  ;;  %73 = vrot.lane.b32.xlu1 %v112_v12, %s142_s14 }
  0x1a   :  { %79 = vrot.lane.b32.xlu0 %v113_v13, %s143_s19  ;;  %85 = vrot.lane.b32.xlu1 %v114_v14, %s144_s20 }
  0x1e   :  { %91 = vrot.lane.b32.xlu0 %v115_v15, %s145_s0 }
  0x74   :  { %v8_v16 = vpop.permute.xlu0 %7   ;;  %v20_v17 = vpop.permute.xlu1 %19  }
  0x75   :  { %10 = vst.msk [vmem:[#allocation0] sm:$0x1] %vm9_vm1, %v8_v16  }
  0x78   :  { %v14_v18 = vpop.permute.xlu0 %13   ;;  %v26_v19 = vpop.permute.xlu1 %25  }
  0x79   :  { %16 = vst.msk [vmem:[#allocation0] sm:$0x1] %vm15_vm2, %v14_v18  }
  0x7a   :  { %22 = vst.msk [vmem:[#allocation0] sm:$0x1] %vm21_vm3, %v20_v17  }
  0x7b   :  { %28 = vst.msk [vmem:[#allocation0] sm:$0x1] %vm27_vm4, %v26_v19  }
  0x7c   :  { %v32_v20 = vpop.permute.xlu0 %31   ;;  %v38_v21 = vpop.permute.xlu1 %37  }
  0x7d   :  { %34 = vst.msk [vmem:[#allocation0] sm:$0x1] %vm33_vm5, %v32_v20  }
  0x7e   :  { %40 = vst.msk [vmem:[#allocation0] sm:$0x1] %vm39_vm6, %v38_v21  }
  0x80   :  { %v44_v22 = vpop.permute.xlu0 %43   ;;  %v50_v23 = vpop.permute.xlu1 %49  }
  0x81   :  { %46 = vst.msk [vmem:[#allocation0] sm:$0x1] %vm45_vm7, %v44_v22  }
  0x82   :  { %52 = vst.msk [vmem:[#allocation0] sm:$0x1] %vm51_vm8, %v50_v23  }
  0x84   :  { %v56_v24 = vpop.permute.xlu0 %55   ;;  %v62_v25 = vpop.permute.xlu1 %61  }
  0x85   :  { %58 = vst.msk [vmem:[#allocation0] sm:$0x1] %vm57_vm9, %v56_v24  }
  0x86   :  { %64 = vst.msk [vmem:[#allocation0] sm:$0x1] %vm63_vm10, %v62_v25  }
  0x88   :  { %v68_v26 = vpop.permute.xlu0 %67   ;;  %v74_v27 = vpop.permute.xlu1 %73  }
  0x89   :  { %70 = vst.msk [vmem:[#allocation0] sm:$0x1] %vm69_vm11, %v68_v26  }
  0x8a   :  { %76 = vst.msk [vmem:[#allocation0] sm:$0x1] %vm75_vm12, %v74_v27  }
  0x8c   :  { %v80_v28 = vpop.permute.xlu0 %79   ;;  %v86_v29 = vpop.permute.xlu1 %85  }
  0x8d   :  { %82 = vst.msk [vmem:[#allocation0] sm:$0x1] %vm81_vm13, %v80_v28  }
  0x8e   :  { %88 = vst.msk [vmem:[#allocation0] sm:$0x1] %vm87_vm14, %v86_v29  }
  0x90   :  { %v92_v30 = vpop.permute.xlu0 %91  }
  0x91   :  { %94 = vst.msk [vmem:[#allocation0] sm:$0x1] %vm93_vm15, %v92_v30  }
  0x98   :  { %v98_v31 = vld [vmem:[#allocation0] sm:$0x1] }
  0x99   :  { %100 = vst [vmem:[%s208_s1] sm:$0x1] %v98_v31 }

// kernel: rowwise_encoder.1
= control target key start
LH: loop header
LB: loop body
LE: loop exit
PB: predicated region body
PF: predicated region fallthrough
CT: control target
= control target key end

     0   :  { %s1493_s1 = inlined_call_operand.vmem [shape: bf16[256,512], index: 1, kind: input, shape index: {}]   ;;  %s1494_s0 = inlined_call_operand.vmem [shape: f32[16,256], index: 0, kind: input, shape index: {}]   ;;  %s1495_s3 = inlined_call_operand.vmem [shape: bf16[512,128], index: 3, kind: input, shape index: {}]   ;;  %s1496_s2 = inlined_call_operand.vmem [shape: f32[1,512], index: 2, kind: input, shape index: {}]   ;;  %s1497_s4 = inlined_call_operand.vmem [shape: f32[1,128], index: 4, kind: input, shape index: {}]   ;;  %s1498_s5 = inlined_call_operand.vmem [shape: f32[16,128], index: 5, kind: output, shape index: {}]  }
   0x1   :  { %v1023_v0 = vld [vmem:[%s1493_s1 + $0x4] ss:$16 sps:$4 sm:$0xff]   ;;  %v1025_v1 = vld [vmem:[%s1493_s1 + $0xc] ss:$16 sps:$4 sm:$0xff]   ;;  %v1027_v2 = vld [vmem:[%s1493_s1] ss:$16 sps:$4 sm:$0xff]  }
   0x2   :  { %433 = vmatprep.subr.bf16.mxu0 %v1023_v0  ;;  %v1028_v3 = vld [vmem:[%s1493_s1 + $0x8] ss:$16 sps:$4 sm:$0xff]   ;;  %476 = vmatprep.subr.bf16.mxu1 %v1025_v1  ;;  %v1029_v4 = vld [vmem:[%s1493_s1 + $0x24] ss:$16 sps:$4 sm:$0xff]   ;;  %v1031_v5 = vld [vmem:[%s1493_s1 + $0x2c] ss:$16 sps:$4 sm:$0xff]  }
   0x3   :  { %434 = vmatpush1.bf16.msra.mxu0 %v1027_v2  ;;  %477 = vmatpush1.bf16.msra.mxu1 %v1028_v3  ;;  %v1033_v6 = vld [vmem:[%s1493_s1 + $0x20] ss:$16 sps:$4 sm:$0xff]   ;;  %v1034_v7 = vld [vmem:[%s1493_s1 + $0x28] ss:$16 sps:$4 sm:$0xff]   ;;  %v1035_v8 = vld [vmem:[%s1493_s1 + $0x44] ss:$16 sps:$4 sm:$0xff]  }
   0x4   :  { %435 = vmatprep.subr.bf16.mxu0 %v1029_v4  ;;  %478 = vmatprep.subr.bf16.mxu1 %v1031_v5  ;;  %v1037_v9 = vld [vmem:[%s1493_s1 + $0x4c] ss:$16 sps:$4 sm:$0xff]   ;;  %v1039_v10 = vld [vmem:[%s1493_s1 + $0x40] ss:$16 sps:$4 sm:$0xff]   ;;  %v1040_v11 = vld [vmem:[%s1493_s1 + $0x48] ss:$16 sps:$4 sm:$0xff]  }
   0x5   :  { %v1041_v12 = vld [vmem:[%s1493_s1 + $0x64] ss:$16 sps:$4 sm:$0xff]   ;;  %v1043_v13 = vld [vmem:[%s1493_s1 + $0x6c] ss:$16 sps:$4 sm:$0xff]   ;;  %v1045_v14 = vld [vmem:[%s1493_s1 + $0x60] ss:$16 sps:$4 sm:$0xff]  }
   0x6   :  { %v1046_v15 = vld [vmem:[%s1493_s1 + $0x68] ss:$16 sps:$4 sm:$0xff]   ;;  %v1047_v16 = vld [vmem:[%s1493_s1 + $0x84] ss:$16 sps:$4 sm:$0xff]   ;;  %v1049_v17 = vld [vmem:[%s1493_s1 + $0x8c] ss:$16 sps:$4 sm:$0xff]  }
   0x7   :  { %436 = vmatpush1.bf16.msra.mxu0 %v1033_v6  ;;  %479 = vmatpush1.bf16.msra.mxu1 %v1034_v7  ;;  %v1051_v18 = vld [vmem:[%s1493_s1 + $0x80] ss:$16 sps:$4 sm:$0xff]   ;;  %v1052_v19 = vld [vmem:[%s1493_s1 + $0x88] ss:$16 sps:$4 sm:$0xff]   ;;  %v1053_v20 = vld [vmem:[%s1493_s1 + $0xa4] ss:$16 sps:$4 sm:$0xff]  }
   0x8   :  { %437 = vmatprep.subr.bf16.mxu0 %v1035_v8  ;;  %480 = vmatprep.subr.bf16.mxu1 %v1037_v9  ;;  %v1055_v21 = vld [vmem:[%s1493_s1 + $0xac] ss:$16 sps:$4 sm:$0xff]   ;;  %v1057_v22 = vld [vmem:[%s1493_s1 + $0xa0] ss:$16 sps:$4 sm:$0xff]   ;;  %v1058_v23 = vld [vmem:[%s1493_s1 + $0xa8] ss:$16 sps:$4 sm:$0xff]  }
   0x9   :  { %v1059_v24 = vld [vmem:[%s1493_s1 + $0xc4] ss:$16 sps:$4 sm:$0xff]   ;;  %v1061_v25 = vld [vmem:[%s1493_s1 + $0xcc] ss:$16 sps:$4 sm:$0xff]   ;;  %v1063_v26 = vld [vmem:[%s1493_s1 + $0xc0] ss:$16 sps:$4 sm:$0xff]  }
   0xa   :  { %v1064_v27 = vld [vmem:[%s1493_s1 + $0xc8] ss:$16 sps:$4 sm:$0xff]   ;;  %v1065_v28 = vld [vmem:[%s1493_s1 + $0xe4] ss:$16 sps:$4 sm:$0xff]   ;;  %v1067_v29 = vld [vmem:[%s1493_s1 + $0xec] ss:$16 sps:$4 sm:$0xff]  }
   0xb   :  { %438 = vmatpush1.bf16.msra.mxu0 %v1039_v10  ;;  %481 = vmatpush1.bf16.msra.mxu1 %v1040_v11  ;;  %v1069_v30 = vld [vmem:[%s1493_s1 + $0xe0] ss:$16 sps:$4 sm:$0xff]   ;;  %v1070_v31 = vld [vmem:[%s1493_s1 + $0xe8] ss:$16 sps:$4 sm:$0xff]   ;;  %v1071_v32 = vld [vmem:[%s1493_s1 + $0x104] ss:$16 sps:$4 sm:$0xff]  }
   0xc   :  { %439 = vmatprep.subr.bf16.mxu0 %v1041_v12  ;;  %482 = vmatprep.subr.bf16.mxu1 %v1043_v13  ;;  %v1073_v33 = vld [vmem:[%s1493_s1 + $0x10c] ss:$16 sps:$4 sm:$0xff]   ;;  %v1075_v34 = vld [vmem:[%s1493_s1 + $0x100] ss:$16 sps:$4 sm:$0xff]   ;;  %v1076_v35 = vld [vmem:[%s1493_s1 + $0x108] ss:$16 sps:$4 sm:$0xff]  }
   0xd   :  { %v1077_v36 = vld [vmem:[%s1493_s1 + $0x124] ss:$16 sps:$4 sm:$0xff]   ;;  %v1079_v37 = vld [vmem:[%s1493_s1 + $0x12c] ss:$16 sps:$4 sm:$0xff]   ;;  %v1081_v38 = vld [vmem:[%s1493_s1 + $0x120] ss:$16 sps:$4 sm:$0xff]  }
   0xe   :  { %v1082_v39 = vld [vmem:[%s1493_s1 + $0x128] ss:$16 sps:$4 sm:$0xff]   ;;  %v1083_v40 = vld [vmem:[%s1493_s1 + $0x144] ss:$16 sps:$4 sm:$0xff]   ;;  %v1085_v41 = vld [vmem:[%s1493_s1 + $0x14c] ss:$16 sps:$4 sm:$0xff]  }
   0xf   :  { %440 = vmatpush1.bf16.msra.mxu0 %v1045_v14  ;;  %483 = vmatpush1.bf16.msra.mxu1 %v1046_v15  ;;  %v1087_v42 = vld [vmem:[%s1493_s1 + $0x140] ss:$16 sps:$4 sm:$0xff]   ;;  %v1088_v43 = vld [vmem:[%s1493_s1 + $0x148] ss:$16 sps:$4 sm:$0xff]   ;;  %v1089_v44 = vld [vmem:[%s1493_s1 + $0x164] ss:$16 sps:$4 sm:$0xff]  }
  0x10   :  { %441 = vmatprep.subr.bf16.mxu0 %v1047_v16  ;;  %484 = vmatprep.subr.bf16.mxu1 %v1049_v17  ;;  %v1091_v45 = vld [vmem:[%s1493_s1 + $0x16c] ss:$16 sps:$4 sm:$0xff]   ;;  %v1093_v47 = vld [vmem:[%s1493_s1 + $0x160] ss:$16 sps:$4 sm:$0xff]   ;;  %v1094_v48 = vld [vmem:[%s1493_s1 + $0x168] ss:$16 sps:$4 sm:$0xff]  }
  0x11   :  { %v22_v46 = vld [vmem:[%s1494_s0 + $0x8] sm:$0xff]  ;;  %v24_v49 = vld [vmem:[%s1494_s0 + $0x18] sm:$0xff]  ;;  %v1095_v50 = vld [vmem:[%s1493_s1 + $0x184] ss:$16 sps:$4 sm:$0xff]  }
  0x12   :  { %v26_v51 = vpack.c.bf16 %v24_v49, %v22_v46  ;;  %v1097_v52 = vld [vmem:[%s1493_s1 + $0x18c] ss:$16 sps:$4 sm:$0xff]   ;;  %v1099_v53 = vld [vmem:[%s1493_s1 + $0x180] ss:$16 sps:$4 sm:$0xff]   ;;  %v1100_v54 = vld [vmem:[%s1493_s1 + $0x188] ss:$16 sps:$4 sm:$0xff]  }
  0x13   :  { %442 = vmatpush1.bf16.msra.mxu0 %v1051_v18  ;;  %485 = vmatpush1.bf16.msra.mxu1 %v1052_v19  ;;  %v1101_v55 = vld [vmem:[%s1493_s1 + $0x1a4] ss:$16 sps:$4 sm:$0xff]   ;;  %v1103_v56 = vld [vmem:[%s1493_s1 + $0x1ac] ss:$16 sps:$4 sm:$0xff]   ;;  %v1105_v57 = vld [vmem:[%s1493_s1 + $0x1a0] ss:$16 sps:$4 sm:$0xff]  }
  0x14   :  { %443 = vmatprep.subr.bf16.mxu0 %v1053_v20  ;;  %486 = vmatprep.subr.bf16.mxu1 %v1055_v21  ;;  %v1106_v58 = vld [vmem:[%s1493_s1 + $0x1a8] ss:$16 sps:$4 sm:$0xff]   ;;  %v1107_v59 = vld [vmem:[%s1493_s1 + $0x1c4] ss:$16 sps:$4 sm:$0xff]   ;;  %v1109_v60 = vld [vmem:[%s1493_s1 + $0x1cc] ss:$16 sps:$4 sm:$0xff]  }
  0x15   :  { %465 = vmatprep.mubr.bf16.mxu0 %v26_v51  ;;  %508 = vmatprep.mubr.bf16.mxu1 %v26_v51  ;;  %v1111_v61 = vld [vmem:[%s1493_s1 + $0x1c0] ss:$16 sps:$4 sm:$0xff]   ;;  %v1112_v62 = vld [vmem:[%s1493_s1 + $0x1c8] ss:$16 sps:$4 sm:$0xff]   ;;  %v1113_v63 = vld [vmem:[%s1493_s1 + $0x1e4] ss:$16 sps:$4 sm:$0xff]  }
  0x16   :  { %v1115_v0 = vld [vmem:[%s1493_s1 + $0x1ec] ss:$16 sps:$4 sm:$0xff]   ;;  %v1117_v1 = vld [vmem:[%s1493_s1 + $0x1e0] ss:$16 sps:$4 sm:$0xff]   ;;  %v1118_v2 = vld [vmem:[%s1493_s1 + $0x1e8] ss:$16 sps:$4 sm:$0xff]  }
  0x17   :  { %444 = vmatpush1.bf16.msra.mxu0 %v1057_v22  ;;  %487 = vmatpush1.bf16.msra.mxu1 %v1058_v23  ;;  %v21_v3 = vld [vmem:[%s1494_s0] sm:$0xff]  ;;  %v23_v4 = vld [vmem:[%s1494_s0 + $0x10] sm:$0xff]  ;;  %v1123_v10 = vld [vmem:[%s1495_s3 + $0x48] sm:$0xff]  }
  0x18   :  { %445 = vmatprep.subr.bf16.mxu0 %v1059_v24  ;;  %488 = vmatprep.subr.bf16.mxu1 %v1061_v25  ;;  %v1119_v5 = vld [vmem:[%s1495_s3 + $0x40] sm:$0xff]   ;;  %v25_v8 = vpack.c.bf16 %v23_v4, %v21_v3  ;;  %v1124_v11 = vld [vmem:[%s1495_s3 + $0xc8] sm:$0xff]   ;;  %v1127_v14 = vld [vmem:[%s1495_s3 + $0x50] sm:$0xff]  }
  0x19   :  { %v1120_v6 = vld [vmem:[%s1495_s3 + $0xc0] sm:$0xff]   ;;  %v1125_v12 = vld [vmem:[%s1495_s3 + $0x8] sm:$0xff]   ;;  %v1128_v15 = vld [vmem:[%s1495_s3 + $0xd0] sm:$0xff]  }
  0x1a   :  { %v1121_v7 = vld [vmem:[%s1495_s3] sm:$0xff]   ;;  %v1126_v13 = vld [vmem:[%s1495_s3 + $0x88] sm:$0xff]   ;;  %v1129_v16 = vld [vmem:[%s1495_s3 + $0x10] sm:$0xff]  }
  0x1b   :  { %446 = vmatpush1.bf16.msra.mxu0 %v1063_v26  ;;  %489 = vmatpush1.bf16.msra.mxu1 %v1064_v27  ;;  %v1122_v9 = vld [vmem:[%s1495_s3 + $0x80] sm:$0xff]   ;;  %v1130_v17 = vld [vmem:[%s1495_s3 + $0x90] sm:$0xff]   ;;  %v1131_v18 = vld [vmem:[%s1495_s3 + $0x58] sm:$0xff]  }
  0x1c   :  { %447 = vmatprep.subr.bf16.mxu0 %v1065_v28  ;;  %490 = vmatprep.subr.bf16.mxu1 %v1067_v29  ;;  %v1132_v19 = vld [vmem:[%s1495_s3 + $0xd8] sm:$0xff]   ;;  %v1135_v22 = vld [vmem:[%s1495_s3 + $0x60] sm:$0xff]   ;;  %v1139_v26 = vld [vmem:[%s1495_s3 + $0x68] sm:$0xff]  }
  0x1d   :  { %v1133_v20 = vld [vmem:[%s1495_s3 + $0x18] sm:$0xff]   ;;  %v1136_v23 = vld [vmem:[%s1495_s3 + $0xe0] sm:$0xff]   ;;  %v1140_v27 = vld [vmem:[%s1495_s3 + $0xe8] sm:$0xff]  }
  0x1e   :  { %v1134_v21 = vld [vmem:[%s1495_s3 + $0x98] sm:$0xff]   ;;  %v1137_v24 = vld [vmem:[%s1495_s3 + $0x20] sm:$0xff]   ;;  %v1141_v28 = vld [vmem:[%s1495_s3 + $0x28] sm:$0xff]  }
  0x1f   :  { %448 = vmatpush1.bf16.msra.mxu0 %v1069_v30  ;;  %491 = vmatpush1.bf16.msra.mxu1 %v1070_v31  ;;  %v1138_v25 = vld [vmem:[%s1495_s3 + $0xa0] sm:$0xff]   ;;  %v1142_v29 = vld [vmem:[%s1495_s3 + $0xa8] sm:$0xff]   ;;  %v1143_v30 = vld [vmem:[%s1495_s3 + $0x70] sm:$0xff]  }
  0x20   :  { %449 = vmatprep.subr.bf16.mxu0 %v1071_v32  ;;  %492 = vmatprep.subr.bf16.mxu1 %v1073_v33  ;;  %v1144_v31 = vld [vmem:[%s1495_s3 + $0xf0] sm:$0xff]  }
  0x21   :  { %v1145_v32 = vld [vmem:[%s1495_s3 + $0x30] sm:$0xff]  }
  0x22   :  { %v1146_v33 = vld [vmem:[%s1495_s3 + $0xb0] sm:$0xff]  }
  0x23   :  { %450 = vmatpush1.bf16.msra.mxu0 %v1075_v34  ;;  %493 = vmatpush1.bf16.msra.mxu1 %v1076_v35  ;;  %v1147_v34 = vld [vmem:[%s1495_s3 + $0x78] sm:$0xff]  }
  0x24   :  { %451 = vmatprep.subr.bf16.mxu0 %v1077_v36  ;;  %494 = vmatprep.subr.bf16.mxu1 %v1079_v37  ;;  %v1148_v35 = vld [vmem:[%s1495_s3 + $0xf8] sm:$0xff]  }
  0x25   :  { %v1149_v36 = vld [vmem:[%s1495_s3 + $0x38] sm:$0xff]  }
  0x26   :  { %v1150_v37 = vld [vmem:[%s1495_s3 + $0xb8] sm:$0xff]  }
  0x27   :  { %452 = vmatpush1.bf16.msra.mxu0 %v1081_v38  ;;  %495 = vmatpush1.bf16.msra.mxu1 %v1082_v39  ;;  %v93_v38 = vlaneseq }
  0x28   :  { %453 = vmatprep.subr.bf16.mxu0 %v1083_v40  ;;  %496 = vmatprep.subr.bf16.mxu1 %v1085_v41 }
  0x29   :  { %v94_v39 = vshrl.u32 %v93_v38, 7 }
  0x2b   :  { %454 = vmatpush1.bf16.msra.mxu0 %v1087_v42  ;;  %497 = vmatpush1.bf16.msra.mxu1 %v1088_v43  ;;  %v95_v40 = vsub.s32 0, %v94_v39  ;;  %v103_v41 = vsub.s32 2, %v94_v39  ;;  %v91_v42 = vld [vmem:[%s1496_s2] sm:$0xf]  ;;  %v99_v43 = vsub.s32 1, %v94_v39 }
  0x2c   :  { %455 = vmatprep.subr.bf16.mxu0 %v1089_v44  ;;  %498 = vmatprep.subr.bf16.mxu1 %v1091_v45  ;;  %v107_v44 = vsub.s32 3, %v94_v39 }
  0x2d   :  { %v96_v45 = vrot.slane %v91_v42, %v95_v40  ;;  %v104_v46 = vrot.slane %v91_v42, %v103_v41 }
  0x2f   :  { %456 = vmatpush1.bf16.msra.mxu0 %v1093_v47  ;;  %499 = vmatpush1.bf16.msra.mxu1 %v1094_v48  ;;  %v100_v47 = vrot.slane %v91_v42, %v99_v43  ;;  %v108_v48 = vrot.slane %v91_v42, %v107_v44 }
  0x30   :  { %457 = vmatprep.subr.bf16.mxu0 %v1095_v50  ;;  %500 = vmatprep.subr.bf16.mxu1 %v1097_v52 }
  0x33   :  { %458 = vmatpush1.bf16.msra.mxu0 %v1099_v53  ;;  %501 = vmatpush1.bf16.msra.mxu1 %v1100_v54 }
  0x34   :  { %459 = vmatprep.subr.bf16.mxu0 %v1101_v55  ;;  %502 = vmatprep.subr.bf16.mxu1 %v1103_v56 }
  0x37   :  { %460 = vmatpush1.bf16.msra.mxu0 %v1105_v57  ;;  %503 = vmatpush1.bf16.msra.mxu1 %v1106_v58 }
  0x38   :  { %461 = vmatprep.subr.bf16.mxu0 %v1107_v59  ;;  %504 = vmatprep.subr.bf16.mxu1 %v1109_v60 }
  0x3b   :  { %462 = vmatpush1.bf16.msra.mxu0 %v1111_v61  ;;  %505 = vmatpush1.bf16.msra.mxu1 %v1112_v62 }
  0x3c   :  { %463 = vmatprep.subr.bf16.mxu0 %v1113_v63  ;;  %506 = vmatprep.subr.bf16.mxu1 %v1115_v0 }
  0x3f   :  { %464 = vmatpush1.bf16.msra.mxu0 %v1117_v1  ;;  %507 = vmatpush1.bf16.msra.mxu1 %v1118_v2 }
  0x40   :  { %979 = vmatprep.subr.bf16.mxu0 %v1119_v5  ;;  %1001 = vmatprep.subr.bf16.mxu1 %v1120_v6 }
  0x42   :  { %466 = vmatmul.mubr.bf16.vlgmr.msra.gmra.mrb[0].mxu0 %v25_v8  ;;  %509 = vmatmul.mubr.bf16.vlgmr.msra.gmra.mrb[0].mxu1 %v25_v8 }
  0x43   :  { %980 = vmatpush3.bf16.msra.mxu0 %v1121_v7  ;;  %1002 = vmatpush3.bf16.msra.mxu1 %v1122_v9 }
  0x44   :  { %981 = vmatprep.subr.bf16.mxu0 %v1123_v10  ;;  %1003 = vmatprep.subr.bf16.mxu1 %v1124_v11 }
  0x47   :  { %982 = vmatpush3.bf16.msra.mxu0 %v1125_v12  ;;  %1004 = vmatpush3.bf16.msra.mxu1 %v1126_v13 }
  0x48   :  { %983 = vmatprep.subr.bf16.mxu0 %v1127_v14  ;;  %1005 = vmatprep.subr.bf16.mxu1 %v1128_v15  ;;  %v946_v15 = vld [vmem:[%s1497_s4] ss:$0 sm:$0xff] }
  0x4b   :  { %984 = vmatpush3.bf16.msra.mxu0 %v1129_v16  ;;  %1006 = vmatpush3.bf16.msra.mxu1 %v1130_v17 }
  0x4c   :  { %985 = vmatprep.subr.bf16.mxu0 %v1131_v18  ;;  %1007 = vmatprep.subr.bf16.mxu1 %v1132_v19 }
  0x4f   :  { %986 = vmatpush3.bf16.msra.mxu0 %v1133_v20  ;;  %1008 = vmatpush3.bf16.msra.mxu1 %v1134_v21 }
  0x50   :  { %987 = vmatprep.subr.bf16.mxu0 %v1135_v22  ;;  %1009 = vmatprep.subr.bf16.mxu1 %v1136_v23 }
  0x53   :  { %988 = vmatpush3.bf16.msra.mxu0 %v1137_v24  ;;  %1010 = vmatpush3.bf16.msra.mxu1 %v1138_v25 }
  0x54   :  { %989 = vmatprep.subr.bf16.mxu0 %v1139_v26  ;;  %1011 = vmatprep.subr.bf16.mxu1 %v1140_v27 }
  0x57   :  { %990 = vmatpush3.bf16.msra.mxu0 %v1141_v28  ;;  %1012 = vmatpush3.bf16.msra.mxu1 %v1142_v29 }
  0x58   :  { %991 = vmatprep.subr.bf16.mxu0 %v1143_v30  ;;  %1013 = vmatprep.subr.bf16.mxu1 %v1144_v31 }
  0x5b   :  { %992 = vmatpush3.bf16.msra.mxu0 %v1145_v32  ;;  %1014 = vmatpush3.bf16.msra.mxu1 %v1146_v33 }
  0x5c   :  { %993 = vmatprep.subr.bf16.mxu0 %v1147_v34  ;;  %1015 = vmatprep.subr.bf16.mxu1 %v1148_v35 }
  0x5f   :  { %994 = vmatpush3.bf16.msra.mxu0 %v1149_v36  ;;  %1016 = vmatpush3.bf16.msra.mxu1 %v1150_v37 }
 0x115   :  { %v467_v49 = vpop.f32.mrb[0].mxu0  ;;  %v510_v50 = vpop.f32.mrb[0].mxu1 }
 0x116   :  { %v468_v51 = vadd.f32 %v467_v49, %v96_v45  ;;  %v511_v52 = vadd.f32 %v510_v50, %v104_v46  ;;  %v469_v53 = vpop.f32.mrb[1].mxu0  ;;  %v512_v54 = vpop.f32.mrb[1].mxu1 }
 0x117   :  { %v470_v55 = vadd.f32 %v469_v53, %v100_v47  ;;  %v513_v56 = vadd.f32 %v512_v54, %v108_v48  ;;  %v471_v57 = vpop.f32.mrb[2].mxu0  ;;  %v514_v58 = vpop.f32.mrb[2].mxu1 }
 0x118   :  { %v521_v59 = vmax.f32 %v511_v52, 0.0  ;;  %v472_v60 = vadd.f32 %v471_v57, %v96_v45  ;;  %v515_v61 = vadd.f32 %v514_v58, %v104_v46  ;;  %v473_v62 = vpop.f32.mrb[3].mxu0  ;;  %v516_v63 = vpop.f32.mrb[3].mxu1  ;;  %v519_v3 = vmax.f32 %v468_v51, 0.0 }
 0x119   :  { %v522_v0 = vmax.f32 %v513_v56, 0.0  ;;  %v474_v1 = vadd.f32 %v473_v62, %v100_v47  ;;  %v517_v2 = vadd.f32 %v516_v63, %v108_v48  ;;  %v520_v6 = vmax.f32 %v470_v55, 0.0 }
 0x11a   :  { %v523_v4 = vmax.f32 %v472_v60, 0.0  ;;  %v525_v5 = vmax.f32 %v515_v61, 0.0 }
 0x11b   :  { %v524_v7 = vmax.f32 %v474_v1, 0.0  ;;  %v526_v8 = vmax.f32 %v517_v2, 0.0 }
 0x11c   :  { %v527_v9 = vpack.c.bf16 %v523_v4, %v519_v3  ;;  %v529_v10 = vpack.c.bf16 %v525_v5, %v521_v59 }
 0x11d   :  { %v528_v11 = vpack.c.bf16 %v524_v7, %v520_v6  ;;  %v530_v12 = vpack.c.bf16 %v526_v8, %v522_v0 }
 0x11f   :  { %826 = vmatprep.mubr.bf16.mxu0 %v528_v11  ;;  %867 = vmatprep.mubr.bf16.mxu1 %v530_v12 }
 0x120   :  { %827 = vmatmul.mubr.bf16.vlgmr.msra.gmra.mrb[4].mxu0 %v527_v9  ;;  %868 = vmatmul.mubr.bf16.vlgmr.msra.gmra.mrb[4].mxu1 %v529_v10 }
 0x1f3   :  { %v995_v13 = vpop.f32.mrb[4].mxu0  ;;  %v1017_v14 = vpop.f32.mrb[4].mxu1 }
 0x1f4   :  { %v996_v16 = vpop.f32.mrb[5].mxu0  ;;  %v1018_v17 = vpop.f32.mrb[5].mxu1 }
 0x1f5   :  { %v997_v18 = vadd.f32 %v996_v16, %v995_v13  ;;  %v1019_v19 = vadd.f32 %v1018_v17, %v1017_v14  ;;  %v998_v20 = vpop.f32.mrb[6].mxu0  ;;  %v1020_v21 = vpop.f32.mrb[6].mxu1 }
 0x1f6   :  { %v999_v22 = vpop.f32.mrb[7].mxu0  ;;  %v1021_v23 = vpop.f32.mrb[7].mxu1 }
 0x1f7   :  { %v829_v24 = vadd.f32 %v997_v18, %v946_v15  ;;  %v1000_v25 = vadd.f32 %v999_v22, %v998_v20  ;;  %v1022_v26 = vadd.f32 %v1021_v23, %v1020_v21 }
 0x1f9   :  { %v870_v27 = vadd.f32 %v1019_v19, %v829_v24  ;;  %v832_v28 = vadd.f32 %v1000_v25, %v946_v15 }
 0x1fb   :  { %876 = vst [vmem:[%s1498_s5] sm:$0xff] %v870_v27  ;;  %v873_v29 = vadd.f32 %v1022_v26, %v832_v28 }
 0x1fd   :  { %877 = vst [vmem:[%s1498_s5 + $0x8] sm:$0xff] %v873_v29 }

</bundles_post_ra>
